<compile_context>
chip_gen: v5e
topology: v5e:2x2
jax: 0.10.0
libtpu: 0.0.40
codegen_flags: <defaults>
</compile_context>

<pallas_src>
import jax
import jax.numpy as jnp
from jax.experimental import pallas as pl
from jax.experimental.pallas import tpu as pltpu


def _linear_kernel(x_ref, wt_ref, b_ref, o_ref):
    # x_ref:  (tb, input_dim)          f32
    # wt_ref: (input_dim, output_dim)  f32  (pre-transposed, VMEM-resident)
    # b_ref:  (1, output_dim)          f32  (VMEM-resident)
    # o_ref:  (tb, output_dim)         f32
    # Single MXU pass with f32 accumulation; bias add broadcasts over rows.
    o_ref[...] = (
        jnp.dot(x_ref[...], wt_ref[...], preferred_element_type=jnp.float32)
        + b_ref[...]
    ).astype(o_ref.dtype)


def _round_up(n, m):
    return ((n + m - 1) // m) * m


def prepare_linear_params(weight, bias):
    """One-time layout prep (do this outside the per-step jit).

    weight: (output_dim, input_dim) -> w_t: (input_dim, output_dim)
    bias:   (output_dim,)           -> b_row: (1, output_dim)
    """
    w_t = jnp.asarray(weight, jnp.float32).T
    b_row = jnp.asarray(bias, jnp.float32).reshape(1, -1)
    return w_t, b_row


def linear_classifier_apply(x, w_t, b_row, *, block_batch=8192,
                            min_split_rows=1024):
    """y = x @ w_t + b_row via a Pallas TPU kernel.

    x:     (batch, input_dim) float32
    w_t:   (input_dim, output_dim) float32   (from prepare_linear_params)
    b_row: (1, output_dim) float32
    returns (batch, output_dim) float32
    """
    batch, input_dim = x.shape
    k_dim, output_dim = w_t.shape
    assert k_dim == input_dim
    x = x.astype(jnp.float32)

    out_shape = jax.ShapeDtypeStruct((batch, output_dim), jnp.float32)

    if batch < min_split_rows:
        # Tiny problem: one grid-less call, whole arrays in VMEM, no pipeline
        # prologue/epilogue.
        return pl.pallas_call(_linear_kernel, out_shape=out_shape)(x, w_t, b_row)

    # Batch-tiled grid.  Force >= 2 tiles so both TensorCores on v7x get work
    # (dimension_semantics=("parallel",) shards the batch axis across TCs).
    n_tiles = max(2, pl.cdiv(batch, block_batch))
    tb = _round_up(pl.cdiv(batch, n_tiles), 8)   # sublane-aligned tile rows
    grid = pl.cdiv(batch, tb)                    # ragged last tile handled by Pallas

    return pl.pallas_call(
        _linear_kernel,
        out_shape=out_shape,
        grid=(grid,),
        in_specs=[
            # x streams tile-by-tile (auto double-buffered, contiguous slabs).
            pl.BlockSpec((tb, input_dim), lambda i: (i, 0)),
            # weight + bias stay VMEM-resident across batch tiles.
            pl.BlockSpec((input_dim, output_dim), lambda i: (0, 0)),
            pl.BlockSpec((1, output_dim), lambda i: (0, 0)),
        ],
        out_specs=pl.BlockSpec((tb, output_dim), lambda i: (i, 0)),
        compiler_params=pltpu.CompilerParams(
            dimension_semantics=("parallel",)),
    )(x, w_t, b_row)


def linear_classifier(x, weight, bias, **kwargs):
    """Convenience wrapper matching the PyTorch forward(x) signature."""
    w_t, b_row = prepare_linear_params(weight, bias)
    return linear_classifier_apply(x, w_t, b_row, **kwargs)


if __name__ == "__main__":
    # Small shapes consistent with the module: a linear classifier head on top
    # of MLP representations.
    batch = 8
    input_dim = 32     # representation dim from the upstream MLP
    output_dim = 10    # number of classes

    key = jax.random.PRNGKey(0)
    kx, kw, kb = jax.random.split(key, 3)

    # Deterministic init matching nn.Linear default: U(-1/sqrt(in), 1/sqrt(in))
    bound = 1.0 / (input_dim ** 0.5)
    weight = jax.random.uniform(kw, (output_dim, input_dim), jnp.float32,
                                minval=-bound, maxval=bound)
    bias = jax.random.uniform(kb, (output_dim,), jnp.float32,
                              minval=-bound, maxval=bound)
    x = jax.random.normal(kx, (batch, input_dim), jnp.float32)

    # One-time parameter prep (outside any per-step jit).
    w_t, b_row = prepare_linear_params(weight, bias)

    # 1) Tiny / grid-less path.
    y = linear_classifier_apply(x, w_t, b_row)
    jax.block_until_ready(y)
    y_ref = x @ weight.T + bias
    assert y.shape == (batch, output_dim)
    assert jnp.allclose(y, y_ref, atol=1e-5, rtol=1e-5)

    # 2) Batch-tiled grid path with a ragged trailing tile (2500 rows ->
    #    2 tiles of 1256 rows, last tile partially masked).
    batch_big = 2500
    xb = jax.random.normal(jax.random.PRNGKey(1), (batch_big, input_dim),
                           jnp.float32)
    yb = linear_classifier_apply(xb, w_t, b_row)
    jax.block_until_ready(yb)
    yb_ref = xb @ weight.T + bias
    assert yb.shape == (batch_big, output_dim)
    assert jnp.allclose(yb, yb_ref, atol=1e-5, rtol=1e-5)

    print("KERNEL_OK")
</pallas_src>

<mosaic_0001>
module attributes {stable_mosaic.version = 11 : i64} {
  func.func @_linear_kernel(%arg0: memref<8x32xf32, #tpu.memory_space<vmem>>, %arg1: memref<32x10xf32, #tpu.memory_space<vmem>>, %arg2: memref<1x10xf32, #tpu.memory_space<vmem>>, %arg3: memref<8x10xf32, #tpu.memory_space<vmem>>) attributes {dimension_semantics = [], scalar_prefetch = 0 : i64, scratch_operands = 0 : i64, tpu.core_type = #tpu.core_type<tc>} {
    %c0 = arith.constant 0 : index
    %c0_0 = arith.constant 0 : index
    %0 = vector.load %arg0[%c0, %c0_0] : memref<8x32xf32, #tpu.memory_space<vmem>>, vector<8x32xf32>
    %c0_1 = arith.constant 0 : index
    %c0_2 = arith.constant 0 : index
    %1 = vector.load %arg1[%c0_1, %c0_2] : memref<32x10xf32, #tpu.memory_space<vmem>>, vector<32x10xf32>
    %cst = arith.constant dense<0.000000e+00> : vector<8x10xf32>
    %2 = tpu.matmul %0, %1, %cst {dimension_numbers = #tpu.dot_dimension_numbers<[1], [0], [0], [1], [0, 0, 1, 1], [], []>} : vector<8x32xf32>, vector<32x10xf32>, vector<8x10xf32> -> vector<8x10xf32>
    %c0_3 = arith.constant 0 : index
    %c0_4 = arith.constant 0 : index
    %3 = vector.load %arg2[%c0_3, %c0_4] : memref<1x10xf32, #tpu.memory_space<vmem>>, vector<1x10xf32>
    %4 = vector.broadcast %3 : vector<1x10xf32> to vector<8x10xf32>
    %5 = arith.addf %2, %4 : vector<8x10xf32>
    %c0_5 = arith.constant 0 : index
    %c0_6 = arith.constant 0 : index
    %6 = vector.load %arg3[%c0_5, %c0_6] : memref<8x10xf32, #tpu.memory_space<vmem>>, vector<8x10xf32>
    tpu.vector_store %arg3[%c0_5, %c0_6], %5 {strides = array<i32>} : memref<8x10xf32, #tpu.memory_space<vmem>>, vector<8x10xf32>,
    return
  }
}

</mosaic_0001>

<bundles_post_ra>
// kernel: tpu_custom_call.1
= control target key start
LH: loop header
LB: loop body
LE: loop exit
PB: predicated region body
PF: predicated region fallthrough
CT: control target
= control target key end

     0   :  { %s137_s0 = inlined_call_operand.vmem [shape: f32[8,32], index: 0, kind: input, shape index: {}]   ;;  %s138_s1 = inlined_call_operand.vmem [shape: f32[32,10], index: 1, kind: input, shape index: {}]   ;;  %s139_s2 = inlined_call_operand.vmem [shape: f32[1,10], index: 2, kind: input, shape index: {}]   ;;  %s140_s3 = inlined_call_operand.hbm [shape: f32[8,10], index: 3, kind: output, shape index: {}]  }
   0x1   :  { %v19_v0 = vld [vmem:[%s138_s1 + $0x18] sm:$0xff]  ;;  %v18_v1 = vld [vmem:[%s138_s1 + $0x10] sm:$0xff]  ;;  %v17_v2 = vld [vmem:[%s138_s1 + $0x8] sm:$0xff] }
   0x2   :  { %40 = vmatpush.msra.mxu0 %v19_v0 }
   0x3   :  { %8 = vsyncpa [#allocation3], 0  ;;  %v16_v3 = vld [vmem:[%s138_s1] sm:$0xff]  ;;  %vm24_vm0 = vcmask 261120   ;;  %s95_s24 = smov [#allocation2]   ;;  %s57_s28 = sshll.u32 %s140_s3, 4  ;;  %s58_s28 = int_to_ptr.hbm [resolvable:$true] %s57_s28 }
   0x4   :  { %41 = vmatpush.msra.mxu0 %v18_v1  ;;  %v15_v4 = vld [vmem:[%s137_s0] sm:$0xff]  ;;  %s55_s25 = sshll.u32 %s95_s24, 4  ;;  %vm48_vm1 = vcmask 80896   ;;  %s56_s25 = int_to_ptr.vmem [resolvable:$true] %s55_s25 }
   0x5   :  { %v68_v5 = vld [vmem:[%s139_s2] ss:$0 sm:$0xff] }
   0x6   :  { %42 = vmatpush.msra.mxu0 %v17_v2 }
   0x8   :  { %43 = vmatpush.msra.mxu0 %v16_v3 }
   0x9   :  { %66 = vmatmul.msk.f32.vlgmr.msra.gmra.mxu0 %vm24_vm0, %v15_v4 }
  0x86   :  { %v45_v6 = vpop.f32.mrf.mxu0 }
  0x87   :  { %v46_v7 = vadd.f32 %v68_v5, %v45_v6 }
  0x89   :  { %49 = vst.msk [vmem:[#allocation2] sm:$0xff] %vm48_vm1, %v46_v7 }
  0x8a   :  { %60 = dma.vmem_to_hbm [thread:$0]  %s56_s25, 128, %s58_s28, [#allocation3]  }
  0x8b   :  { %93 = dma.done.wait [#allocation3], 128  }
  0x8c   :  { %94 = vsyncadd [#allocation3], 4294967168 }
  0x8d   :  { %65 = vsyncpa [#allocation3], 1 }

</bundles_post_ra>
